<compile_context>
chip_gen: v7x
topology: tpu7x:2x2x1
jax: 0.10.0
libtpu: 0.0.40
codegen_flags: <defaults>
</compile_context>

<pallas_src>
import jax
import jax.numpy as jnp
from jax.experimental import pallas as pl
from jax.experimental.pallas import tpu as pltpu


def _round_up(x, m):
    return ((x + m - 1) // m) * m


def _make_kernel(num_slices, row_block, num_row_blocks):
    """Kernel over one (tb, td) tile; loops over rb-row register sub-blocks."""

    def kernel(dlog_ref, *refs):
        feat_refs = refs[:num_slices]
        out_ref = refs[num_slices]

        def process(r0):
            # --- slice-attention weights for this row sub-block -------------
            dl = dlog_ref[pl.ds(r0, row_block), :].astype(jnp.float32)  # [rb, 2S]
            # 2-class softmax -> P(class 0) == sigmoid(l0 - l1)   (exp -> EUP)
            p = 1.0 / (1.0 + jnp.exp(-dl))
            z = p[:, :num_slices] * p[:, num_slices:]                   # [rb, S] in (0,1)
            # softmax over slices; z is bounded so no max-subtraction needed
            ez = jnp.exp(z)
            denom = jnp.sum(ez, axis=-1, keepdims=True)                 # tiny XLU reduce
            w = ez * pl.reciprocal(denom)                               # exact (DMA bound)
            # --- weighted sum over slices: unrolled VPU FMA chain ------------
            acc = w[:, 0:1] * feat_refs[0][pl.ds(r0, row_block), :].astype(jnp.float32)
            for s in range(1, num_slices):
                acc = acc + w[:, s:s + 1] * feat_refs[s][
                    pl.ds(r0, row_block), :].astype(jnp.float32)
            out_ref[pl.ds(r0, row_block), :] = acc.astype(out_ref.dtype)

        if num_row_blocks == 1:
            process(0)
        else:
            def body(r, carry):
                process(pl.multiple_of(r * row_block, row_block))
                return carry
            jax.lax.fori_loop(0, num_row_blocks, body, 0)

    return kernel


def _pick_tiles(B, D, S, feat_bytes, out_bytes, batch_tile, d_tile, row_block):
    # D tile: keep the output lane-dense; only split when D is large & divisible.
    if d_tile is not None:
        td = max(1, min(int(d_tile), D))
    elif D > 512 and D % 128 == 0:
        td = next(c for c in (512, 384, 256, 128) if D % c == 0)
    else:
        td = D
    td_pad = _round_up(td, 128)

    # Register row block: acc (rb x td_pad, f32) + one feat sub-block ~ 16 vregs each.
    if row_block is None:
        rb = max(8, min(256, (64 * 1024) // (td_pad * 4)))
    else:
        rb = max(8, int(row_block))
    rb = (rb // 8) * 8

    # Batch (DMA) tile from the per-generation VMEM budget.
    try:
        vmem_cap = int(pltpu.get_tpu_info().vmem_capacity_bytes)
    except Exception:
        vmem_cap = 64 * 1024 * 1024            # v7x per-core size: safe everywhere
    # Double-buffered bytes per tile row: S feat inputs + output + lane-padded dlog.
    per_row = 2 * (S * td_pad * feat_bytes + td_pad * out_bytes + 128 * 4)
    if batch_tile is None:
        tb = (vmem_cap // 4) // per_row        # ~1/4 of physical VMEM for this pipeline
        tb = min(tb, 2048)                     # step overhead already amortized here
        tb = min(tb, _round_up(pl.cdiv(B, 4), 8))  # >= ~4 grid steps: pipeline + v7x 2 TCs
    else:
        tb = int(batch_tile)
    tb = max(8, (tb // 8) * 8)
    rb = min(rb, tb)
    tb = max(rb, (tb // rb) * rb)              # in-kernel row loop must tile tb exactly
    vmem_limit = vmem_cap // 2                 # raise the scoped default (16/32 MiB)
    return tb, td, rb, vmem_limit


def slice_attention_pallas(d_ind, d_pred, feats, *, batch_tile=None, d_tile=None,
                           row_block=None, out_dtype=None, vmem_limit_bytes=None,
                           interpret=False):
    """d_ind, d_pred: [B, S] (class0 - class1) logits.
    feats: list of S per-slice [B, D] feature arrays (NOT stacked).  Returns [B, D]."""
    feats = list(feats)
    S = len(feats)
    B, D = feats[0].shape
    feat_dtype = feats[0].dtype
    assert all(f.shape == (B, D) and f.dtype == feat_dtype for f in feats)
    assert d_ind.shape == (B, S) and d_pred.shape == (B, S), (d_ind.shape, d_pred.shape, S)
    out_dtype = jnp.dtype(out_dtype) if out_dtype is not None else jnp.dtype(feat_dtype)

    # One tiny lane-packed block of logit differences per row tile.
    dlog = jnp.concatenate([d_ind, d_pred], axis=1).astype(jnp.float32)   # [B, 2S]

    tb, td, rb, vmem_limit = _pick_tiles(
        B, D, S, jnp.dtype(feat_dtype).itemsize, out_dtype.itemsize,
        batch_tile, d_tile, row_block)
    if vmem_limit_bytes is not None:
        vmem_limit = int(vmem_limit_bytes)

    grid = (pl.cdiv(B, tb), pl.cdiv(D, td))
    kernel = _make_kernel(S, rb, tb // rb)

    return pl.pallas_call(
        kernel,
        out_shape=jax.ShapeDtypeStruct((B, D), out_dtype),
        grid_spec=pltpu.PrefetchScalarGridSpec(
            num_scalar_prefetch=0,
            grid=grid,
            in_specs=[pl.BlockSpec((tb, 2 * S), lambda i, j: (i, 0))]
                    + [pl.BlockSpec((tb, td), lambda i, j: (i, j)) for _ in range(S)],
            out_specs=pl.BlockSpec((tb, td), lambda i, j: (i, j)),
        ),
        compiler_params=pltpu.CompilerParams(
            dimension_semantics=("parallel", "parallel"),
            vmem_limit_bytes=vmem_limit),
        interpret=interpret,
    )(dlog, *feats)


def slice_attention_module_forward(intermediate_output_dict,
                                   slice_ind_key="_slice_ind_",
                                   slice_pred_key="_slice_pred_",
                                   slice_pred_feat_key="_slice_feat_",
                                   **kwargs):
    """Mirrors SliceAttentionModule.forward: gathers dict entries and runs the
    Pallas kernel.  Per-slice features are handed to the kernel as separate
    arrays (no [B, S, D] stack), so the kernel streams them straight from
    their original HBM buffers."""
    ind_names = sorted(k for k in intermediate_output_dict if slice_ind_key in k)
    pred_names = sorted(k for k in intermediate_output_dict if slice_pred_key in k)
    feat_names = sorted(k for k in intermediate_output_dict if slice_pred_feat_key in k)

    # TODO(synk): the emmental slicing ind/pred heads are binary; for >2 classes
    # replace the sigmoid(l0 - l1) trick with a per-head softmax[:, 0].
    def _diffs(names):
        cols = []
        for n in names:
            logits = intermediate_output_dict[n][0]
            assert logits.shape[-1] == 2, logits.shape
            cols.append(logits[:, 0] - logits[:, 1])
        return jnp.stack(cols, axis=1)          # tiny [B, S]

    d_ind = _diffs(ind_names)
    d_pred = _diffs(pred_names)
    feats = [intermediate_output_dict[n][0] for n in feat_names]   # S x [B, D], no stack
    return slice_attention_pallas(d_ind, d_pred, feats, **kwargs)


def _reference(ind_logits, pred_logits, feats):
    ind_p0 = jax.nn.softmax(ind_logits, axis=-1)[:, :, 0]
    pred_p0 = jax.nn.softmax(pred_logits, axis=-1)[:, :, 0]
    w = jax.nn.softmax(ind_p0 * pred_p0, axis=1)
    return jnp.sum(w[:, :, None] * feats.astype(jnp.float32), axis=1)


if __name__ == "__main__":
    # Small shapes consistent with the module: batch=40 (exercises a multi-step
    # pipelined grid AND the masked ragged last row-tile), num_slices=4,
    # num_classes=2, hidden=128 (lane-dense output).  row_block=8 exercises the
    # in-kernel row sub-block loop.
    B, S, C, D = 40, 4, 2, 128
    key = jax.random.PRNGKey(0)
    keys = jax.random.split(key, 3 * S)

    intermediate_output_dict = {}
    for s in range(S):
        intermediate_output_dict[f"task_slice:base_slice{s}_slice_ind_head"] = [
            jax.random.normal(keys[3 * s + 0], (B, C), dtype=jnp.float32)]
        intermediate_output_dict[f"task_slice:base_slice{s}_slice_pred_head"] = [
            jax.random.normal(keys[3 * s + 1], (B, C), dtype=jnp.float32)]
        intermediate_output_dict[f"task_slice:base_slice{s}_slice_feat_head"] = [
            jax.random.normal(keys[3 * s + 2], (B, D), dtype=jnp.float32)]

    out = slice_attention_module_forward(intermediate_output_dict, row_block=8)
    out = jax.block_until_ready(out)

    # Sanity-check against a pure-JAX reference of the same math.
    ind_names = sorted(k for k in intermediate_output_dict if "_slice_ind_" in k)
    pred_names = sorted(k for k in intermediate_output_dict if "_slice_pred_" in k)
    feat_names = sorted(k for k in intermediate_output_dict if "_slice_feat_" in k)
    ref = _reference(
        jnp.stack([intermediate_output_dict[n][0] for n in ind_names], axis=1),
        jnp.stack([intermediate_output_dict[n][0] for n in pred_names], axis=1),
        jnp.stack([intermediate_output_dict[n][0] for n in feat_names], axis=1),
    )
    assert out.shape == (B, D), out.shape
    err = float(jnp.max(jnp.abs(out - ref)))
    assert jnp.allclose(out, ref, atol=1e-4, rtol=1e-4), err

    print("KERNEL_OK")
</pallas_src>

<mosaic_0001>
module attributes {stable_mosaic.version = 11 : i64} {
  func.func @kernel(%arg0: i32, %arg1: i32, %arg2: memref<16x8xf32, #tpu.memory_space<vmem>>, %arg3: memref<16x128xf32, #tpu.memory_space<vmem>>, %arg4: memref<16x128xf32, #tpu.memory_space<vmem>>, %arg5: memref<16x128xf32, #tpu.memory_space<vmem>>, %arg6: memref<16x128xf32, #tpu.memory_space<vmem>>, %arg7: memref<16x128xf32, #tpu.memory_space<vmem>>) attributes {dimension_semantics = [#tpu.dimension_semantics<parallel>, #tpu.dimension_semantics<parallel>], iteration_bounds = array<i64: 3, 1>, scalar_prefetch = 0 : i64, scratch_operands = 0 : i64, tpu.core_type = #tpu.core_type<tc>, window_params = [{transform_indices = @transform_0, window_bounds = array<i64: 16, 8>}, {transform_indices = @transform_1, window_bounds = array<i64: 16, 128>}, {transform_indices = @transform_2, window_bounds = array<i64: 16, 128>}, {transform_indices = @transform_3, window_bounds = array<i64: 16, 128>}, {transform_indices = @transform_4, window_bounds = array<i64: 16, 128>}, {transform_indices = @transform_5, window_bounds = array<i64: 16, 128>}]} {
    %c0_i32 = arith.constant 0 : i32
    %c2_i32 = arith.constant 2 : i32
    %0 = arith.addi %c0_i32, %c2_i32 : i32
    %c1_i32 = arith.constant 1 : i32
    scf.for %arg8 = %c0_i32 to %0 step %c1_i32  : i32 {
      %c8_i32 = arith.constant 8 : i32
      %1 = arith.muli %arg8, %c8_i32 : i32
      %2 = tpu.assume_multiple %1, 8 : i32
      %3 = arith.index_cast %2 : i32 to index
      %c0 = arith.constant 0 : index
      %4 = vector.load %arg2[%3, %c0] : memref<16x8xf32, #tpu.memory_space<vmem>>, vector<8x8xf32>
      %cst = arith.constant 0.000000e+00 : f32
      %5 = vector.broadcast %cst : f32 to vector<8x8xf32>
      %6 = arith.subf %5, %4 : vector<8x8xf32>
      %7 = math.exp %6 : vector<8x8xf32>
      %cst_1 = arith.constant 1.000000e+00 : f32
      %8 = vector.broadcast %cst_1 : f32 to vector<8x8xf32>
      %9 = arith.addf %8, %7 : vector<8x8xf32>
      %cst_2 = arith.constant 1.000000e+00 : f32
      %10 = vector.broadcast %cst_2 : f32 to vector<8x8xf32>
      %11 = arith.divf %10, %9 : vector<8x8xf32>
      %12 = vector.extract_strided_slice %11 {offsets = [0, 0], sizes = [8, 4], strides = [1, 1]} : vector<8x8xf32> to vector<8x4xf32>
      %13 = vector.extract_strided_slice %11 {offsets = [0, 4], sizes = [8, 4], strides = [1, 1]} : vector<8x8xf32> to vector<8x4xf32>
      %14 = arith.mulf %12, %13 : vector<8x4xf32>
      %15 = math.exp %14 : vector<8x4xf32>
      %cst_3 = arith.constant dense<0.000000e+00> : vector<8xf32>
      %16 = vector.multi_reduction <add>, %15, %cst_3 [1] : vector<8x4xf32> to vector<8xf32>
      %17 = vector.shape_cast %16 : vector<8xf32> to vector<8x1xf32>
      %18 = tpu.reciprocal %17 : vector<8x1xf32> -> vector<8x1xf32>
      %19 = vector.broadcast %18 : vector<8x1xf32> to vector<8x4xf32>
      %20 = arith.mulf %15, %19 : vector<8x4xf32>
      %21 = vector.extract_strided_slice %20 {offsets = [0, 0], sizes = [8, 1], strides = [1, 1]} : vector<8x4xf32> to vector<8x1xf32>
      %22 = arith.index_cast %2 : i32 to index
      %c0_4 = arith.constant 0 : index
      %23 = vector.load %arg3[%22, %c0_4] : memref<16x128xf32, #tpu.memory_space<vmem>>, vector<8x128xf32>
      %24 = vector.broadcast %21 : vector<8x1xf32> to vector<8x128xf32>
      %25 = arith.mulf %24, %23 : vector<8x128xf32>
      %26 = vector.extract_strided_slice %20 {offsets = [0, 1], sizes = [8, 1], strides = [1, 1]} : vector<8x4xf32> to vector<8x1xf32>
      %27 = arith.index_cast %2 : i32 to index
      %c0_5 = arith.constant 0 : index
      %28 = vector.load %arg4[%27, %c0_5] : memref<16x128xf32, #tpu.memory_space<vmem>>, vector<8x128xf32>
      %29 = vector.broadcast %26 : vector<8x1xf32> to vector<8x128xf32>
      %30 = arith.mulf %29, %28 : vector<8x128xf32>
      %31 = arith.addf %25, %30 : vector<8x128xf32>
      %32 = vector.extract_strided_slice %20 {offsets = [0, 2], sizes = [8, 1], strides = [1, 1]} : vector<8x4xf32> to vector<8x1xf32>
      %33 = arith.index_cast %2 : i32 to index
      %c0_6 = arith.constant 0 : index
      %34 = vector.load %arg5[%33, %c0_6] : memref<16x128xf32, #tpu.memory_space<vmem>>, vector<8x128xf32>
      %35 = vector.broadcast %32 : vector<8x1xf32> to vector<8x128xf32>
      %36 = arith.mulf %35, %34 : vector<8x128xf32>
      %37 = arith.addf %31, %36 : vector<8x128xf32>
      %38 = vector.extract_strided_slice %20 {offsets = [0, 3], sizes = [8, 1], strides = [1, 1]} : vector<8x4xf32> to vector<8x1xf32>
      %39 = arith.index_cast %2 : i32 to index
      %c0_7 = arith.constant 0 : index
      %40 = vector.load %arg6[%39, %c0_7] : memref<16x128xf32, #tpu.memory_space<vmem>>, vector<8x128xf32>
      %41 = vector.broadcast %38 : vector<8x1xf32> to vector<8x128xf32>
      %42 = arith.mulf %41, %40 : vector<8x128xf32>
      %43 = arith.addf %37, %42 : vector<8x128xf32>
      %44 = arith.index_cast %2 : i32 to index
      %c0_8 = arith.constant 0 : index
      %45 = vector.load %arg7[%44, %c0_8] : memref<16x128xf32, #tpu.memory_space<vmem>>, vector<8x128xf32>
      tpu.vector_store %arg7[%44, %c0_8], %43 {strides = array<i32>} : memref<16x128xf32, #tpu.memory_space<vmem>>, vector<8x128xf32>,
    }
    %c2_i32_0 = arith.constant 2 : i32
    return
  }
  func.func @transform_0(%arg0: i32, %arg1: i32) -> (i32, i32) {
    %c0_i32 = arith.constant 0 : i32
    %c0_i32_0 = arith.constant 0 : i32
    return %arg0, %c0_i32 : i32, i32
  }
  func.func @transform_1(%arg0: i32, %arg1: i32) -> (i32, i32) {
    %c0_i32 = arith.constant 0 : i32
    return %arg0, %arg1 : i32, i32
  }
  func.func @transform_2(%arg0: i32, %arg1: i32) -> (i32, i32) {
    %c0_i32 = arith.constant 0 : i32
    return %arg0, %arg1 : i32, i32
  }
  func.func @transform_3(%arg0: i32, %arg1: i32) -> (i32, i32) {
    %c0_i32 = arith.constant 0 : i32
    return %arg0, %arg1 : i32, i32
  }
  func.func @transform_4(%arg0: i32, %arg1: i32) -> (i32, i32) {
    %c0_i32 = arith.constant 0 : i32
    return %arg0, %arg1 : i32, i32
  }
  func.func @transform_5(%arg0: i32, %arg1: i32) -> (i32, i32) {
    %c0_i32 = arith.constant 0 : i32
    return %arg0, %arg1 : i32, i32
  }
}

</mosaic_0001>

<bundles_post_ra>
// kernel: tpu_custom_call.1
= control target key start
LH: loop header
LB: loop body
LE: loop exit
PB: predicated region body
PF: predicated region fallthrough
CT: control target
= control target key end

     0   :  { %s1434_s0 = inlined_call_operand.vmem [shape: f32[40,8], index: 0, kind: input, shape index: {}]   ;;  %s1435_s1 = inlined_call_operand.vmem [shape: f32[40,128], index: 1, kind: input, shape index: {}]   ;;  %s1436_s2 = inlined_call_operand.hbm [shape: f32[40,128], index: 2, kind: input, shape index: {}]   ;;  %s1437_s3 = inlined_call_operand.hbm [shape: f32[40,128], index: 3, kind: input, shape index: {}]   ;;  %s1438_s4 = inlined_call_operand.hbm [shape: f32[40,128], index: 4, kind: input, shape index: {}]   ;;  %s1439_s5 = inlined_call_operand.hbm [shape: f32[40,128], index: 5, kind: output, shape index: {}]  }
   0x1   :  { %1441 = sst [smem:[#allocation13_spill]] %s1436_s2 }
   0x2   :  { %10 = vsyncpa [#allocation3], 0 }
   0x3   :  { %12 = vsyncpa [#allocation3 + $0x1], 0 }
   0x4   :  { %13 = vsyncpa [#allocation6], 0 }
   0x5   :  { %15 = vsyncpa [#allocation6 + $0x1], 0 }
   0x6   :  { %16 = vsyncpa [#allocation4], 0 }
   0x7   :  { %18 = vsyncpa [#allocation4 + $0x1], 0  ;;  %s1101_s18 = smov 0   ;;  %s1103_s19 = smov 0  }
   0x8   :  { %s1105_s20 = smov 0   ;;  %s1107_s21 = smov 0  }
   0x9   :  { %s1109_s22 = smov 0   ;;  %s1111_s23 = smov 0  }
   0xa LB: > { %s1132_s24 = sadd.s32 4294967295, %s1048_s23   ;;  %s736_s25 = sadd.s32 4294967294, %s1048_s23   ;;  %s1048_s23 = sphi %s1111_s23, %s24_s23   ;;  %s1044_s22 = sphi %s1109_s22, %s1455_s22   ;;  %s1040_s21 = sphi %s1107_s21, %s1454_s21   ;;  %s1036_s20 = sphi %s1105_s20, %s1453_s20   ;;  %s1032_s19 = sphi %s1103_s19, %s1452_s19   ;;  %s1028_s18 = sphi %s1101_s18, %s1451_s18  }
   0xb   : > { %s36_s26 = sadd.s32 1, %s1044_s22  ;;  %s99_s27 = sadd.s32 1, %s1036_s20 }
   0xc   : > { %p38_p0 = scmp.ge.s32.totalorder %s36_s26, 3  ;;  %p106_p1 = scmp.ne.s32.totalorder %s1036_s20, %s1032_s19 }
   0xd   : > { %p107_p2 = scmp.eq.s32.totalorder %s1048_s23, 0  ;;  %p112_p3 = scmp.ne.s32.totalorder %s1032_s19, %s1028_s18 }
   0xe   : > { %s1457_s26 = smov (%p38_p0, %s36_s26), 0  ;;  %p113_p5 = scmp.eq.s32.totalorder %s1132_s24, 0 }
   0xf   : > { %1442 = sst [smem:[#allocation12_spill]] %s1457_s26  ;;  %p1144_p4 = por %p107_p2, %p106_p1 }
  0x10   : > { %s94_s29 = ssub.s32 %s1044_s22, %s1457_s26  ;;  %p194_p6 = scmp.eq.s32.totalorder %s1132_s24, 2 }
  0x11   : > { %p97_p7 = scmp.eq.s32.totalorder %s94_s29, 0  ;;  %p1152_p8 = por %p113_p5, %p112_p3 }
  0x12   : > { %p1156_p9 = por %p194_p6, %p106_p1  ;;  %p200_p10 = scmp.eq.s32.totalorder %s736_s25, 2 }
  0x13   : > { %s1161_s7 = scalar_select %p97_p7, %s1036_s20, %s99_s27  }
  0x14   : > { %s1445_s6 = scalar_select %p1156_p9, 1, 0 }
  0x15   : > { %p1163_p11 = por %p200_p10, %p112_p3  ;;  %p738_p12 = scmp.ge.s32.totalorder %s1048_s23, 3 }
  0x17   : > { %s1446_s8 = scalar_select %p1163_p11, 1, 0 }
  0x18   : > { %216 = sbr.rel (%p738_p12) target bundleno = 141 (0x8d), region = 16 }
  0x1f   : > { %256 = sbr.rel (!%p1144_p4) target bundleno = 71 (0x47), region = 28  ;;  %s257_s9 = sand.u32 (%p1144_p4), 1, %s1036_s20  }
  0x20   : > { %s740_s10 = sshll.u32 (%p1144_p4), %s1044_s22, 1  ;;  %s739_s11 = sshll.u32 (%p1144_p4), %s257_s9, 4 }
  0x21   : > { %s263_s12 = ssub.s32 (%p1144_p4), 5, %s740_s10  ;;  %s1175_s15 = scalar_lea.sflag (%p1144_p4), [#allocation3], %s257_s9 }
  0x22   : > { %p264_p13 = scmp.lt.s32.totalorder (%p1144_p4), %s263_s12, 2  ;;  %s261_s16 = scalar_lea.vmem (%p1144_p4), [#allocation2], %s739_s11 }
  0x26   : > { %s1459_s12 = smov (!%p264_p13, %s263_s12), 2 }
  0x27   : > { %s1172_s13 = sshll.u32 %s1459_s12, 7 }
  0x28   : > { %s268_s14 = ssub.s32 256, %s1172_s13 }
  0x29   : > { %269 = vsyncadd %s1175_s15, %s268_s14  ;;  %p742_p0 = scmp.ne.s32.totalorder %s1172_s13, 0  ;;  %s779_s17 = sshll.u32 %s1044_s22, 8 }
  0x2a   : > { %s1447_s2 = sld [smem:[#allocation13_spill]]  ;;  %s275_s9 = sshll.u32 %s261_s16, 4  ;;  %s1185_s9 = int_to_ptr.vmem [resolvable:$true] %s275_s9 }
  0x30   : > { %s1183_s29 = scalar_lea.hbm %s1447_s2, %s779_s17  ;;  %s878_s14 = scalar_lea.hbm %s1447_s2, 640 }
  0x31   : > { %s874_s10 = scalar_lea.hbm %s1183_s29, %s1172_s13  ;;  %p879_p5 = scmp.lt.u32.totalorder %s1183_s29, %s1447_s2 }
  0x32   : > { %p875_p1 = scmp.ne.s32.totalorder %s1183_s29, %s874_s10  ;;  %p880_p6 = scmp.lt.u32.totalorder %s878_s14, %s874_s10 }
  0x33   : > { %p882_p10 = scmp.lt.u32.totalorder %s874_s10, %s1183_s29 }
  0x34   : > { %p876_p2 = pnand %p875_p1, %p742_p0  ;;  %p881_p7 = por %p880_p6, %p879_p5 }
  0x36   : > { %p877_p3 = pneg %p876_p2  ;;  %p883_p12 = por %p882_p10, %p881_p7 }
  0x38   : > { %p884_p13 = pnand %p883_p12, %p877_p3 }
  0x3a   : > { %887 = shalt.err (!%p884_p13)
}
  0x3b   : > { %s888_s16 = scalar_lea.vmem %s1185_s9, %s1172_s13  ;;  %s1054_s17 = smov [#allocation2]  }
  0x3c   : > { %p889_p1 = scmp.ne.s32.totalorder %s1185_s9, %s888_s16  ;;  %s892_s27 = sshll.u32 %s1054_s17, 4  ;;  %s893_s27 = int_to_ptr.vmem [resolvable:$false] %s892_s27 }
  0x3d   : > { %s894_s26 = scalar_lea.vmem %s893_s27, 512  ;;  %p895_p9 = scmp.lt.s32.totalorder %s1185_s9, %s893_s27 }
  0x3e   : > { %p890_p2 = pnand %p889_p1, %p742_p0  ;;  %p896_p5 = scmp.lt.s32.totalorder %s894_s26, %s888_s16 }
  0x40   : > { %p891_p11 = pneg %p890_p2  ;;  %p897_p6 = por %p896_p5, %p895_p9 }
  0x42   : > { %p898_p7 = pnand %p897_p6, %p891_p11 }
  0x44   : > { %901 = shalt.err (!%p898_p7)
}
  0x45   : > { %s1055_s10 = smov 128   ;;  %s1056_s11 = smov 8  }
  0x46   : > { %281 = dma.hbm_to_vmem [thread:$0]  (%p742_p0), %s1183_s29, %s1172_s13, %s1185_s9, %s1175_s15, %s1055_s10, %s1055_s10, %s1056_s11  }
  0x47 PF: > { %284 = sbr.rel (!%p1144_p4) target bundleno = 106 (0x6a), region = 32  ;;  %s285_s12 = sand.u32 (%p1144_p4), 1, %s1048_s23  }
  0x48   : > { %s287_s14 = sand.u32 (%p1144_p4), 1, %s1036_s20   ;;  %s747_s16 = sshll.u32 (%p1144_p4), %s1044_s22, 1 }
  0x49   : > { %s746_s25 = sshll.u32 (%p1144_p4), %s287_s14, 4  ;;  %s291_s17 = ssub.s32 (%p1144_p4), 5, %s747_s16 }
  0x4a   : > { %p292_p9 = scmp.lt.s32.totalorder (%p1144_p4), %s291_s17, 2  ;;  %s1220_s2 = scalar_lea.sflag (%p1144_p4), [#allocation6], %s285_s12 }
  0x4b   : > { %s289_s13 = scalar_lea.vmem (%p1144_p4), [#allocation5], %s746_s25 }
  0x4e   : > { %s1461_s17 = smov (!%p292_p9, %s291_s17), 2 }
  0x4f   : > { %s1217_s27 = sshll.u32 %s1461_s17, 7 }
  0x50   : > { %s296_s26 = ssub.s32 256, %s1217_s27 }
  0x51   : > { %297 = vsyncadd %s1220_s2, %s296_s26  ;;  %p749_p11 = scmp.ne.s32.totalorder %s1217_s27, 0  ;;  %s780_s15 = sshll.u32 %s1044_s22, 8 }
  0x52   : > { %s1228_s10 = scalar_lea.hbm %s1437_s3, %s780_s15  ;;  %s303_s11 = sshll.u32 %s289_s13, 4  ;;  %s1230_s11 = int_to_ptr.vmem [resolvable:$true] %s303_s11 }
  0x53   : > { %s902_s12 = scalar_lea.hbm %s1228_s10, %s1217_s27  ;;  %s906_s16 = scalar_lea.hbm %s1437_s3, 640 }
  0x54   : > { %p903_p0 = scmp.ne.s32.totalorder %s1228_s10, %s902_s12  ;;  %p907_p12 = scmp.lt.u32.totalorder %s1228_s10, %s1437_s3 }
  0x55   : > { %p908_p13 = scmp.lt.u32.totalorder %s906_s16, %s902_s12  ;;  %p910_p2 = scmp.lt.u32.totalorder %s902_s12, %s1228_s10 }
  0x56   : > { %p904_p3 = pnand %p903_p0, %p749_p11 }
  0x57   : > { %p909_p1 = por %p908_p13, %p907_p12 }
  0x58   : > { %p905_p10 = pneg %p904_p3 }
  0x59   : > { %p911_p5 = por %p910_p2, %p909_p1 }
  0x5b   : > { %p912_p6 = pnand %p911_p5, %p905_p10 }
  0x5d   : > { %915 = shalt.err (!%p912_p6)
}
  0x5e   : > { %s916_s13 = scalar_lea.vmem %s1230_s11, %s1217_s27  ;;  %s1057_s15 = smov [#allocation5]  }
  0x5f   : > { %p917_p7 = scmp.ne.s32.totalorder %s1230_s11, %s916_s13  ;;  %s920_s29 = sshll.u32 %s1057_s15, 4  ;;  %s921_s29 = int_to_ptr.vmem [resolvable:$false] %s920_s29 }
  0x60   : > { %s922_s9 = scalar_lea.vmem %s921_s29, 512  ;;  %p923_p3 = scmp.lt.s32.totalorder %s1230_s11, %s921_s29 }
  0x61   : > { %p918_p9 = pnand %p917_p7, %p749_p11  ;;  %p924_p12 = scmp.lt.s32.totalorder %s922_s9, %s916_s13 }
  0x63   : > { %p919_p0 = pneg %p918_p9  ;;  %p925_p13 = por %p924_p12, %p923_p3 }
  0x65   : > { %p926_p1 = pnand %p925_p13, %p919_p0 }
  0x67   : > { %929 = shalt.err (!%p926_p1)
}
  0x68   : > { %s1058_s12 = smov 128   ;;  %s1059_s14 = smov 8  }
  0x69   : > { %309 = dma.hbm_to_vmem [thread:$0]  (%p749_p11), %s1228_s10, %s1217_s27, %s1230_s11, %s1220_s2, %s1058_s12, %s1058_s12, %s1059_s14  }
  0x6a PF: > { %312 = sbr.rel (!%p1144_p4) target bundleno = 141 (0x8d), region = 36  ;;  %s313_s25 = sand.u32 (%p1144_p4), 1, %s1048_s23  }
  0x6b   : > { %s315_s16 = sand.u32 (%p1144_p4), 1, %s1036_s20   ;;  %s754_s26 = sshll.u32 (%p1144_p4), %s1044_s22, 1 }
  0x6c   : > { %s753_s17 = sshll.u32 (%p1144_p4), %s315_s16, 4  ;;  %s319_s13 = ssub.s32 (%p1144_p4), 5, %s754_s26 }
  0x6d   : > { %p320_p10 = scmp.lt.s32.totalorder (%p1144_p4), %s319_s13, 2  ;;  %s1265_s9 = scalar_lea.sflag (%p1144_p4), [#allocation6], %s313_s25 }
  0x6e   : > { %s317_s2 = scalar_lea.vmem (%p1144_p4), [#allocation7], %s753_s17 }
  0x71   : > { %s1463_s13 = smov (!%p320_p10, %s319_s13), 2 }
  0x72   : > { %s1262_s15 = sshll.u32 %s1463_s13, 7 }
  0x73   : > { %s324_s29 = ssub.s32 256, %s1262_s15 }
  0x74   : > { %325 = vsyncadd %s1265_s9, %s324_s29  ;;  %p756_p4 = scmp.ne.s32.totalorder %s1262_s15, 0  ;;  %s781_s28 = sshll.u32 %s1044_s22, 8 }
  0x75   : > { %s1273_s11 = scalar_lea.hbm %s1438_s4, %s781_s28  ;;  %s331_s12 = sshll.u32 %s317_s2, 4  ;;  %s1275_s12 = int_to_ptr.vmem [resolvable:$true] %s331_s12 }
  0x76   : > { %s930_s14 = scalar_lea.hbm %s1273_s11, %s1262_s15  ;;  %s934_s17 = scalar_lea.hbm %s1438_s4, 640 }
  0x77   : > { %p931_p11 = scmp.ne.s32.totalorder %s1273_s11, %s930_s14  ;;  %p935_p6 = scmp.lt.u32.totalorder %s1273_s11, %s1438_s4 }
  0x78   : > { %p936_p7 = scmp.lt.u32.totalorder %s934_s17, %s930_s14  ;;  %p938_p0 = scmp.lt.u32.totalorder %s930_s14, %s1273_s11 }
  0x79   : > { %p932_p2 = pnand %p931_p11, %p756_p4 }
  0x7a   : > { %p937_p9 = por %p936_p7, %p935_p6 }
  0x7b   : > { %p933_p5 = pneg %p932_p2 }
  0x7c   : > { %p939_p3 = por %p938_p0, %p937_p9 }
  0x7e   : > { %p940_p12 = pnand %p939_p3, %p933_p5 }
  0x80   : > { %943 = shalt.err (!%p940_p12)
}
  0x81   : > { %s944_s29 = scalar_lea.vmem %s1275_s12, %s1262_s15  ;;  %s1060_s2 = smov [#allocation7]  }
  0x82   : > { %p945_p13 = scmp.ne.s32.totalorder %s1275_s12, %s944_s29  ;;  %s948_s28 = sshll.u32 %s1060_s2, 4  ;;  %s949_s28 = int_to_ptr.vmem [resolvable:$false] %s948_s28 }
  0x83   : > { %s950_s27 = scalar_lea.vmem %s949_s28, 512  ;;  %p951_p11 = scmp.lt.s32.totalorder %s1275_s12, %s949_s28 }
  0x84   : > { %p946_p1 = pnand %p945_p13, %p756_p4  ;;  %p952_p2 = scmp.lt.s32.totalorder %s950_s27, %s944_s29 }
  0x86   : > { %p947_p10 = pneg %p946_p1  ;;  %p953_p6 = por %p952_p2, %p951_p11 }
  0x88   : > { %p954_p7 = pnand %p953_p6, %p947_p10 }
  0x8a   : > { %957 = shalt.err (!%p954_p7)
}
  0x8b   : > { %s1061_s10 = smov 128   ;;  %s1062_s14 = smov 8  }
  0x8c   : > { %337 = dma.hbm_to_vmem [thread:$0]  (%p756_p4), %s1273_s11, %s1262_s15, %s1275_s12, %s1265_s9, %s1061_s10, %s1061_s10, %s1062_s14  }
  0x8d PF: > { %p760_p5 = scmp.ge.s32.totalorder %s1048_s23, 1  ;;  %p339_p9 = scmp.lt.s32.totalorder %s1048_s23, 4 }
  0x8f   : > { %p340_p0 = pnand %p760_p5, %p339_p9 }
  0x90   : > { %s1305_s25 = sand.u32 (!%p340_p0), 1, %s1032_s19  }
  0x91   : > { %343 = sbr.rel (%p340_p0) target bundleno = 663 (0x297), region = 40  ;;  %s1308_s16 = sshll.u32 (!%p340_p0), %s1305_s25, 4 }
  0x92   : > { %s346_s17 = scalar_lea.sflag (!%p340_p0), [#allocation3], %s1305_s25  ;;  %s349_s26 = scalar_lea.vmem (!%p340_p0), [#allocation2], %s1308_s16 }
  0x98   : > { %1015 = dma.done.wait (%p1152_p8), %s346_s17, 256  }
  0x99   : > { %1017 = vsyncadd (%p1152_p8), %s346_s17, 4294967040  ;;  %s354_s15 = sand.u32 1, %s1132_s24   ;;  %s358_s11 = scalar_lea.vmem [#allocation5], %s1308_s16 }
  0x9a   : > { %s355_s9 = scalar_lea.sflag [#allocation6], %s354_s15 }
  0x9b   : > { %1019 = dma.done.wait (%p1152_p8), %s355_s9, 512  }
  0x9c   : > { %1021 = vsyncadd (%p1152_p8), %s355_s9, 4294966784  ;;  %s1323_s12 = sshll.u32 %s1040_s21, 1  ;;  %s367_s14 = scalar_lea.vmem [#allocation7], %s1308_s16 }
  0x9d   : > { %p430_p4 = scmp.lt.s32.totalorder %s1323_s12, 4  ;;  %s424_s17 = scalar_lea.vmem [#allocation8], %s1308_s16 }
  0x9e   : > { %s1339_s15 = smov 0  }
  0x9f   : > { %s431_s13 = scalar_select %p430_p4, %s1323_s12, 4 }
  0xa1   : > { %s766_s29 = sshll.u32 %s431_s13, 3 }
  0xa2   : > { %s1330_s24 = scalar_lea.vmem %s1434_s0, %s766_s29  ;;  %s1335_s30 = scalar_lea.vmem %s1435_s1, %s766_s29 }
  0xa3 LB: >> { %s1345_s9 = sshll.u32 %s1052_s15, 3  ;;  %s1063_s29 = smov 124   ;;  %vm498_vm0 = vcmask 31744   ;;  %v1064_v11 = vmov 0   ;;  %v1065_v12 = vmov 3   ;;  %v1066_v16 = vmov 1   ;;  %s1052_s15 = sphi %s1339_s15, %s481_s15  }
  0xa4   : >> { %s483_s13 = scalar_lea.vmem %s1330_s24, %s1345_s9  ;;  %861 = vset.pattern.permute.xlu1 %v1064_v11  ;;  %865 = vset.pattern.permute.xlu0 %v1065_v12  ;;  %v1067_v17 = vmov 2   ;;  %s512_s2 = scalar_lea.vmem %s349_s26, %s1345_s9 [#allocation2] }
  0xa5   : >> { %v484_v0 = vld [vmem:[%s483_s13] sm:$0xff]  ;;  %s504_s28 = scalar_lea.vmem %s1335_s30, %s1345_s9  ;;  %s520_s27 = scalar_lea.vmem %s358_s11, %s1345_s9 [#allocation5] }
  0xa6   : >> { %v485_v1 = vsub.f32 0.0, %v484_v0  ;;  %v513_v20 = vld [vmem:[%s512_s2] sm:$0xff]  ;;  %s528_s10 = scalar_lea.vmem %s367_s14, %s1345_s9 [#allocation7]  ;;  %s536_s13 = scalar_lea.vmem %s424_s17, %s1345_s9 [#allocation8] }
  0xa7   : >> { %v505_v21 = vld [vmem:[%s504_s28] sm:$0xff]  ;;  %s481_s15 = sadd.s32 1, %s1052_s15  }
  0xa8   : >> { %v486_v2 = vmul.f32 1.442695, %v485_v1  ;;  %v521_v22 = vld [vmem:[%s520_s27] sm:$0xff]  ;;  %p478_p8 = scmp.ge.s32.totalorder %s481_s15, 2  }
  0xa9   : >> { %v529_v27 = vld [vmem:[%s528_s10] sm:$0xff]  ;;  %p1448_p3 = scmp.ne.s32.totalorder (%p478_p8), %s1445_s6, 0 }
  0xaa   : >> { %866 = vpow2.f32 %v486_v2 }
  0xb4   : >> { %v867_v3 = vpop.eup %866 }
  0xb5   : >> { %v488_v4 = vadd.f32 1.0, %v867_v3 }
  0xb7   : >> { %868 = vrcp.f32 %v488_v4 }
  0xc1   : >> { %v869_v5 = vpop.eup %868 }
  0xc2   : >> { %492 = vrot.lane.b32.xlu0 %v869_v5, %s1063_s29  ;;  %s539_s29 = scalar_lea.sflag (%p478_p8), [#allocation4], %s1305_s25 }
 0x134   : >> { %v493_v6 = vpop.permute.xlu0 %492 }
 0x135   : >> { %v495_v7 = vmul.f32 %v869_v5, %v493_v6 }
 0x137   : >> { %v496_v8 = vmul.f32 1.442695, %v495_v7 }
 0x139   : >> { %870 = vpow2.f32 %v496_v8 }
 0x143   : >> { %v871_v9 = vpop.eup %870 }
 0x144   : >> { %v499_v10 = vsel %vm498_vm0, %v871_v9, 0.0 }
 0x145   : >> { %500 = vadd.xlane.f32.xlu0 %v499_v10 }
 0x1d2   : >> { %v501_v13 = vpop.xlane.xlu0 %500 }
 0x1d3   : >> { %872 = vrcp.f32 %v501_v13 }
 0x1dd   : >> { %v873_v14 = vpop.eup %872 }
 0x1de   : >> { %v503_v15 = vmul.f32 %v873_v14, %v871_v9 }
 0x1e0   : >> { %508 = vperm.xlu1 %861, %v503_v15  }
 0x1e4   : >> { %862 = vset.pattern.permute.xlu1 %v1066_v16 }
 0x1e5   : >> { %515 = vperm.xlu1 %862, %v503_v15  }
 0x1e9   : >> { %863 = vset.pattern.permute.xlu1 %v1067_v17 }
 0x1ea   : >> { %523 = vperm.xlu1 %863, %v503_v15  }
 0x1ee   : >> { %864 = vset.pattern.permute.xlu1 %v1065_v12 }
 0x1ef   : >> { %531 = vperm.xlu1 %864, %v503_v15  }
 0x25f   : >> { %v509_v18 = vpop.permute.xlu1 %508 }
 0x260   : >> { %v511_v25 = vmul.f32 %v509_v18, %v505_v21 }
 0x264   : >> { %v516_v19 = vpop.permute.xlu1 %515 }
 0x265   : >> { %v518_v23 = vmul.f32 %v516_v19, %v513_v20 }
 0x267   : >> { %v519_v28 = vadd.f32 %v518_v23, %v511_v25 }
 0x269   : >> { %v524_v24 = vpop.permute.xlu1 %523 }
 0x26a   : >> { %v526_v26 = vmul.f32 %v524_v24, %v521_v22 }
 0x26c   : >> { %v527_v30 = vadd.f32 %v526_v26, %v519_v28 }
 0x26d   : > { %480 = sbr.rel (!%p478_p8) target bundleno = 163 (0xa3), region = 128 }
 0x26e   : >> { %v532_v29 = vpop.permute.xlu1 %531 }
 0x26f   : >> { %v534_v31 = vmul.f32 %v532_v29, %v529_v27 }
 0x271   : >> { %v535_v32 = vadd.f32 %v534_v31, %v527_v30 }
 0x273   : >> { %537 = vst [vmem:[%s536_s13] sm:$0xff] %v535_v32 }
 0x274   : > { %545 = sbr.rel (!%p1448_p3) target bundleno = 663 (0x297), region = 63  ;;  %s547_s2 = ssub.s32 (%p1448_p3), 5, %s1323_s12 }
 0x275   : > { %p548_p12 = scmp.lt.s32.totalorder (%p1448_p3), %s547_s2, 2 }
 0x27b   : > { %s1465_s2 = smov (!%p548_p12, %s547_s2), 2 }
 0x27c   : > { %s1370_s28 = sshll.u32 %s1465_s2, 7 }
 0x27d   : > { %s552_s9 = ssub.s32 256, %s1370_s28 }
 0x27e   : > { %553 = vsyncadd %s539_s29, %s552_s9  ;;  %p773_p13 = scmp.ne.s32.totalorder %s1370_s28, 0  ;;  %s782_s26 = sshll.u32 %s1040_s21, 8 }
 0x27f   : > { %s1380_s24 = scalar_lea.hbm %s1439_s5, %s782_s26  ;;  %s559_s12 = sshll.u32 %s424_s17, 4  ;;  %s1384_s12 = int_to_ptr.vmem [resolvable:$true] %s559_s12 }
 0x280   : > { %s958_s30 = scalar_lea.vmem %s1384_s12, %s1370_s28  ;;  %s1068_s14 = smov [#allocation8]  }
 0x281   : > { %p959_p1 = scmp.ne.s32.totalorder %s1384_s12, %s958_s30  ;;  %s962_s15 = sshll.u32 %s1068_s14, 4  ;;  %s963_s15 = int_to_ptr.vmem [resolvable:$false] %s962_s15 }
 0x282   : > { %s964_s21 = scalar_lea.vmem %s963_s15, 512  ;;  %p965_p2 = scmp.lt.s32.totalorder %s1384_s12, %s963_s15 }
 0x283   : > { %p960_p10 = pnand %p959_p1, %p773_p13  ;;  %p966_p6 = scmp.lt.s32.totalorder %s964_s21, %s958_s30 }
 0x285   : > { %p961_p11 = pneg %p960_p10  ;;  %p967_p7 = por %p966_p6, %p965_p2 }
 0x287   : > { %p968_p5 = pnand %p967_p7, %p961_p11 }
 0x289   : > { %971 = shalt.err (!%p968_p5)
}
 0x28a   : > { %s972_s16 = scalar_lea.hbm %s1380_s24, %s1370_s28  ;;  %s976_s10 = scalar_lea.hbm %s1439_s5, 640 }
 0x28b   : > { %p973_p9 = scmp.ne.s32.totalorder %s1380_s24, %s972_s16  ;;  %p977_p8 = scmp.lt.u32.totalorder %s1380_s24, %s1439_s5 }
 0x28c   : > { %p978_p3 = scmp.lt.u32.totalorder %s976_s10, %s972_s16  ;;  %p980_p1 = scmp.lt.u32.totalorder %s972_s16, %s1380_s24 }
 0x28d   : > { %p974_p0 = pnand %p973_p9, %p773_p13 }
 0x28e   : > { %p979_p12 = por %p978_p3, %p977_p8 }
 0x28f   : > { %p975_p4 = pneg %p974_p0 }
 0x290   : > { %p981_p10 = por %p980_p1, %p979_p12 }
 0x292   : > { %p982_p11 = pnand %p981_p10, %p975_p4 }
 0x294   : > { %985 = shalt.err (!%p982_p11)
}
 0x295   : > { %s1069_s9 = smov 128   ;;  %s1070_s26 = smov 8  }
 0x296   : > { %565 = dma.vmem_to_hbm [thread:$0]  (%p773_p13), %s1384_s12, %s1370_s28, %s1380_s24, %s539_s29, %s1069_s9, %s1069_s9, %s1070_s26  }
 0x297 PF: > { %p791_p2 = scmp.ge.s32.totalorder %s1048_s23, 2  ;;  %s574_s6 = sand.u32 1, %s1028_s18  }
 0x298   : > { %p1449_p6 = scmp.ne.s32.totalorder %s1446_s8, 0  ;;  %s575_s11 = scalar_lea.sflag [#allocation4], %s574_s6 }
 0x29a   : > { %p788_p7 = pnand %p791_p2, %p1449_p6 }
 0x29c   : > { %1023 = dma.done.wait (!%p788_p7), %s575_s11, 256  }
 0x29d   : > { %1025 = vsyncadd (!%p788_p7), %s575_s11, 4294967040  ;;  %s24_s23 = sadd.s32 1, %s1048_s23   ;;  %s1450_s25 = sld [smem:[#allocation12_spill]] }
 0x29e   : > { %p21_p5 = scmp.ge.s32.totalorder %s24_s23, 5   ;;  %s1451_s18 = smov %s1032_s19 }
 0x29f   : > { %s1452_s19 = smov %s1036_s20  ;;  %s1453_s20 = smov %s1161_s7 }
 0x2a0   : > { %s1454_s21 = smov %s1044_s22  ;;  %23 = sbr.rel (!%p21_p5) target bundleno = 10 (0xa), region = 139 }
 0x2a3   : > { %s1455_s22 = smov %s1450_s25 }
 0x2a7   :  { %580 = vsyncpa [#allocation3], 1 }
 0x2a8   :  { %582 = vsyncpa [#allocation3 + $0x1], 1 }
 0x2a9   :  { %583 = vsyncpa [#allocation6], 1 }
 0x2aa   :  { %585 = vsyncpa [#allocation6 + $0x1], 1 }
 0x2ab   :  { %586 = vsyncpa [#allocation4], 1 }
 0x2ac   :  { %588 = vsyncpa [#allocation4 + $0x1], 1 }

</bundles_post_ra>
